<compile_context>
chip_gen: v5e
topology: v5e:2x2
jax: 0.10.0
libtpu: 0.0.40
codegen_flags: <defaults>
</compile_context>

<pallas_src>
import functools
import math

import jax
import jax.numpy as jnp
from jax import lax
from jax.experimental import pallas as pl
from jax.experimental.pallas import tpu as pltpu

LANES = 128
SUBLANES = 8
# Sentinel used only for the (rare) sub-128 tail pad: with true=0 the focal
# loss at pred=-50 underflows to ~0 in f32 (exp(-50) ~ 1.9e-22), so padded
# elements contribute nothing to the sum.  Relies on the in-kernel f32 cast.
PAD_PRED = -50.0


def _pow_gamma(base, gamma):
    """base**gamma with half-integer gammas specialized to sqrt/mul chains."""
    twog = gamma * 2.0
    if twog == int(twog) and 0 <= int(twog) <= 8:
        n = int(twog)
        if n == 0:
            return jnp.ones_like(base)
        out = None
        if n % 2:
            out = jnp.sqrt(base)
            n -= 1
        for _ in range(n // 2):
            out = base if out is None else out * base
        return out
    return jnp.power(base, gamma)


def _focal_kernel(pred_ref, true_ref, out_ref, *, gamma, alpha, tm, chunk,
                  num_tiles, valid_rows_last):
    i = pl.program_id(0)

    @pl.when(i == 0)
    def _():
        out_ref[...] = jnp.zeros_like(out_ref)

    n_chunks = tm // chunk
    # Trace-time constants for the folded alpha factor.
    c0 = 1.0 - alpha
    c1 = 2.0 * alpha - 1.0

    def elem_loss(x, y):
        # Shared transcendental: e = exp(-|x|) feeds both BCE and sigmoid.
        e = jnp.exp(-jnp.abs(x))
        # BCEWithLogitsLoss(reduction='none'): max(x,0) - x*y + log1p(exp(-|x|))
        bce = jnp.maximum(x, 0.0) - x * y + jnp.log1p(e)
        # Stable sigmoid: EUP approx reciprocal + one Newton step (~f32 exact).
        d = 1.0 + e
        r = pl.reciprocal(d, approx=True)
        inv = r * (2.0 - d * r)
        p = jnp.where(x >= 0, inv, e * inv)
        # 1 - p_t = y + p*(1 - 2y)   (exact algebra, also valid for soft y).
        one_minus_pt = jnp.maximum(y + p * (1.0 - 2.0 * y), 0.0)
        af = c0 + c1 * y
        mf = _pow_gamma(one_minus_pt, gamma)
        return bce * af * mf

    def accumulate(masked):
        def body(c, acc):
            r0 = pl.multiple_of(c * chunk, chunk)
            x = pred_ref[pl.ds(r0, chunk), :].astype(jnp.float32)
            y = true_ref[pl.ds(r0, chunk), :].astype(jnp.float32)
            loss = elem_loss(x, y)
            if masked:
                # Rows beyond the array extent (partial last block) hold
                # unspecified data; select them to exactly zero.
                row = r0 + lax.broadcasted_iota(jnp.int32, (chunk, LANES), 0)
                loss = jnp.where(row < valid_rows_last, loss, 0.0)
            part = loss.reshape(chunk // SUBLANES, SUBLANES, LANES).sum(axis=0)
            return acc + part

        init = jnp.zeros((SUBLANES, LANES), jnp.float32)
        unroll = max(1, min(4, n_chunks))
        return lax.fori_loop(0, n_chunks, body, init, unroll=unroll)

    if valid_rows_last == tm:
        # No tile is partial -> no masking anywhere.
        out_ref[...] += accumulate(False)
    elif num_tiles == 1:
        out_ref[...] += accumulate(True)
    else:
        @pl.when(i != num_tiles - 1)
        def _():
            out_ref[...] += accumulate(False)

        @pl.when(i == num_tiles - 1)
        def _():
            out_ref[...] += accumulate(True)


def _focal_elementwise_jnp(pred, true, gamma, alpha):
    """Fused XLA reference / small-N fast path (elementwise loss)."""
    x = pred.astype(jnp.float32)
    y = true.astype(jnp.float32)
    bce = jnp.maximum(x, 0.0) - x * y + jnp.log1p(jnp.exp(-jnp.abs(x)))
    p = jax.nn.sigmoid(x)
    p_t = y * p + (1.0 - y) * (1.0 - p)
    af = y * alpha + (1.0 - y) * (1.0 - alpha)
    mf = (1.0 - p_t) ** gamma
    return bce * af * mf


def focal_loss(pred, true, *, gamma=1.5, alpha=0.25, reduction="mean",
               tile_m=4096, chunk_rows=64, min_pallas_elements=256 * 1024,
               use_pallas=None):
    """Focal loss over BCE-with-logits, matching FocalLoss.forward."""
    assert pred.shape == true.shape
    total_n = int(math.prod(pred.shape))

    if reduction == "none":
        # TODO(synk): elementwise Pallas output (per-element out_spec) not
        # implemented; serve 'none' with the fused XLA path instead.
        return _focal_elementwise_jnp(pred, true, gamma, alpha)

    if use_pallas is None:
        # For tiny inputs the pallas_call launch overhead dwarfs the work.
        use_pallas = total_n >= min_pallas_elements
    if not use_pallas:
        s = jnp.sum(_focal_elementwise_jnp(pred, true, gamma, alpha))
        return s / jnp.float32(total_n) if reduction == "mean" else s

    p_flat = pred.reshape(-1)
    t_flat = true.reshape(-1)
    if total_n % LANES != 0:
        # TODO(synk): avoid this full-array copy for N not a multiple of 128
        # by handling the <128-element tail with a jnp side path.
        pad = LANES - total_n % LANES
        p_flat = jnp.pad(p_flat, (0, pad), constant_values=PAD_PRED)
        t_flat = jnp.pad(t_flat, (0, pad), constant_values=0)
    rows = p_flat.shape[0] // LANES
    p2 = p_flat.reshape(rows, LANES)   # copy-free metadata reshape
    t2 = t_flat.reshape(rows, LANES)

    # Row alignment: 8 sublanes for 4-byte, 16 for 2-byte, 32 for 1-byte dtypes
    # (so narrow `true` dtypes also satisfy the min-tile rules).
    itemsize = min(jnp.dtype(pred.dtype).itemsize, jnp.dtype(true.dtype).itemsize)
    row_align = SUBLANES * max(1, 4 // max(1, itemsize))

    tm = min(int(tile_m), -(-rows // row_align) * row_align)
    tm = max(row_align, (tm // row_align) * row_align)
    chunk = min(int(chunk_rows), tm)
    chunk = max(SUBLANES, (chunk // SUBLANES) * SUBLANES)
    tm = -(-tm // chunk) * chunk                 # tm is a multiple of chunk
    num_tiles = -(-rows // tm)
    valid_rows_last = rows - (num_tiles - 1) * tm  # in (0, tm]

    kernel = functools.partial(
        _focal_kernel, gamma=float(gamma), alpha=float(alpha), tm=tm,
        chunk=chunk, num_tiles=num_tiles, valid_rows_last=valid_rows_last)

    partial = pl.pallas_call(
        kernel,
        out_shape=jax.ShapeDtypeStruct((SUBLANES, LANES), jnp.float32),
        grid_spec=pltpu.PrefetchScalarGridSpec(
            num_scalar_prefetch=0,
            grid=(num_tiles,),
            in_specs=[
                pl.BlockSpec((tm, LANES), lambda i: (i, 0)),
                pl.BlockSpec((tm, LANES), lambda i: (i, 0)),
            ],
            out_specs=pl.BlockSpec((SUBLANES, LANES), lambda i: (0, 0)),
        ),
        compiler_params=pltpu.CompilerParams(
            dimension_semantics=("arbitrary",),
            vmem_limit_bytes=32 * 1024 * 1024),
    )(p2, t2)

    total = jnp.sum(partial, dtype=jnp.float32)
    if reduction == "mean":
        return total / jnp.float32(total_n)
    return total  # 'sum'


def _reference(pred, true, gamma=1.5, alpha=0.25):
    return jnp.mean(_focal_elementwise_jnp(pred, true, gamma, alpha))


if __name__ == "__main__":
    key = jax.random.PRNGKey(0)
    k1, k2 = jax.random.split(key)
    # NCHW, small shapes: batch=2, channels=4, spatial=16x16
    pred = jax.random.normal(k1, (2, 4, 16, 16), dtype=jnp.float32) * 2.0
    true = (jax.random.uniform(k2, (2, 4, 16, 16)) > 0.7).astype(jnp.float32)

    # Force the Pallas path (the small-N fast path would otherwise take over).
    out = focal_loss(pred, true, gamma=1.5, alpha=0.25, reduction="mean",
                     use_pallas=True)
    out = jax.block_until_ready(out)

    ref = _reference(pred, true)
    assert jnp.allclose(out, ref, rtol=1e-4, atol=1e-6), (out, ref)
    print("KERNEL_OK")
</pallas_src>

<mosaic_0001>
module attributes {stable_mosaic.version = 11 : i64} {
  func.func @_focal_kernel(%arg0: i32, %arg1: memref<16x128xf32, #tpu.memory_space<vmem>>, %arg2: memref<16x128xf32, #tpu.memory_space<vmem>>, %arg3: memref<8x128xf32, #tpu.memory_space<vmem>>) attributes {dimension_semantics = [#tpu.dimension_semantics<arbitrary>], iteration_bounds = array<i64: 1>, scalar_prefetch = 0 : i64, scratch_operands = 0 : i64, tpu.core_type = #tpu.core_type<tc>, window_params = [{transform_indices = @transform_0, window_bounds = array<i64: 16, 128>}, {transform_indices = @transform_1, window_bounds = array<i64: 16, 128>}, {pipeline_mode = #tpu.pipeline_mode<synchronous>, transform_indices = @transform_2, window_bounds = array<i64: 8, 128>}]} {
    %c0_i32 = arith.constant 0 : i32
    %0 = arith.cmpi eq, %arg0, %c0_i32 : i32
    %1 = arith.extui %0 : i1 to i32
    %c0_i32_0 = arith.constant 0 : i32
    %2 = arith.cmpi ne, %1, %c0_i32_0 : i32
    scf.if %2 {
      %cst_18 = arith.constant 0.000000e+00 : f32
      %53 = vector.broadcast %cst_18 : f32 to vector<8x128xf32>
      %c0_19 = arith.constant 0 : index
      %c0_20 = arith.constant 0 : index
      %54 = vector.load %arg3[%c0_19, %c0_20] : memref<8x128xf32, #tpu.memory_space<vmem>>, vector<8x128xf32>
      tpu.vector_store %arg3[%c0_19, %c0_20], %53 {strides = array<i32>} : memref<8x128xf32, #tpu.memory_space<vmem>>, vector<8x128xf32>,
    } else {
    }
    %c0 = arith.constant 0 : index
    %c0_1 = arith.constant 0 : index
    %3 = vector.load %arg3[%c0, %c0_1] : memref<8x128xf32, #tpu.memory_space<vmem>>, vector<8x128xf32>
    %cst = arith.constant 0.000000e+00 : f32
    %4 = vector.broadcast %cst : f32 to vector<8x128xf32>
    %c0_i32_2 = arith.constant 0 : i32
    %c16_i32 = arith.constant 16 : i32
    %5 = arith.muli %c0_i32_2, %c16_i32 : i32
    %6 = tpu.assume_multiple %5, 16 : i32
    %7 = arith.index_cast %6 : i32 to index
    %c0_3 = arith.constant 0 : index
    %8 = vector.load %arg1[%7, %c0_3] : memref<16x128xf32, #tpu.memory_space<vmem>>, vector<16x128xf32>
    %9 = arith.index_cast %6 : i32 to index
    %c0_4 = arith.constant 0 : index
    %10 = vector.load %arg2[%9, %c0_4] : memref<16x128xf32, #tpu.memory_space<vmem>>, vector<16x128xf32>
    %11 = math.absf %8 : vector<16x128xf32>
    %cst_5 = arith.constant 0.000000e+00 : f32
    %12 = vector.broadcast %cst_5 : f32 to vector<16x128xf32>
    %13 = arith.subf %12, %11 : vector<16x128xf32>
    %14 = math.exp %13 : vector<16x128xf32>
    %cst_6 = arith.constant 0.000000e+00 : f32
    %15 = vector.broadcast %cst_6 : f32 to vector<16x128xf32>
    %16 = arith.maximumf %8, %15 : vector<16x128xf32>
    %17 = arith.mulf %8, %10 : vector<16x128xf32>
    %18 = arith.subf %16, %17 : vector<16x128xf32>
    %19 = math.log1p %14 : vector<16x128xf32>
    %20 = arith.addf %18, %19 : vector<16x128xf32>
    %cst_7 = arith.constant 1.000000e+00 : f32
    %21 = vector.broadcast %cst_7 : f32 to vector<16x128xf32>
    %22 = arith.addf %21, %14 : vector<16x128xf32>
    %23 = tpu.reciprocal %22 {approx = true} : vector<16x128xf32> -> vector<16x128xf32>
    %24 = arith.mulf %22, %23 : vector<16x128xf32>
    %cst_8 = arith.constant 2.000000e+00 : f32
    %25 = vector.broadcast %cst_8 : f32 to vector<16x128xf32>
    %26 = arith.subf %25, %24 : vector<16x128xf32>
    %27 = arith.mulf %23, %26 : vector<16x128xf32>
    %cst_9 = arith.constant 0.000000e+00 : f32
    %28 = vector.broadcast %cst_9 : f32 to vector<16x128xf32>
    %29 = arith.cmpf oge, %8, %28 : vector<16x128xf32>
    %30 = arith.mulf %14, %27 : vector<16x128xf32>
    %31 = arith.select %29, %27, %30 : vector<16x128xi1>, vector<16x128xf32>
    %cst_10 = arith.constant 2.000000e+00 : f32
    %32 = vector.broadcast %cst_10 : f32 to vector<16x128xf32>
    %33 = arith.mulf %32, %10 : vector<16x128xf32>
    %cst_11 = arith.constant 1.000000e+00 : f32
    %34 = vector.broadcast %cst_11 : f32 to vector<16x128xf32>
    %35 = arith.subf %34, %33 : vector<16x128xf32>
    %36 = arith.mulf %31, %35 : vector<16x128xf32>
    %37 = arith.addf %10, %36 : vector<16x128xf32>
    %cst_12 = arith.constant 0.000000e+00 : f32
    %38 = vector.broadcast %cst_12 : f32 to vector<16x128xf32>
    %39 = arith.maximumf %37, %38 : vector<16x128xf32>
    %cst_13 = arith.constant -5.000000e-01 : f32
    %40 = vector.broadcast %cst_13 : f32 to vector<16x128xf32>
    %41 = arith.mulf %40, %10 : vector<16x128xf32>
    %cst_14 = arith.constant 7.500000e-01 : f32
    %42 = vector.broadcast %cst_14 : f32 to vector<16x128xf32>
    %43 = arith.addf %42, %41 : vector<16x128xf32>
    %44 = math.sqrt %39 : vector<16x128xf32>
    %45 = arith.mulf %44, %39 : vector<16x128xf32>
    %46 = arith.mulf %20, %43 : vector<16x128xf32>
    %47 = arith.mulf %46, %45 : vector<16x128xf32>
    %48 = vector.shape_cast %47 : vector<16x128xf32> to vector<2x8x128xf32>
    %cst_15 = arith.constant dense<0.000000e+00> : vector<8x128xf32>
    %49 = vector.multi_reduction <add>, %48, %cst_15 [0] : vector<2x8x128xf32> to vector<8x128xf32>
    %50 = arith.addf %4, %49 : vector<8x128xf32>
    %c1_i32 = arith.constant 1 : i32
    %51 = arith.addf %3, %50 : vector<8x128xf32>
    %c0_16 = arith.constant 0 : index
    %c0_17 = arith.constant 0 : index
    %52 = vector.load %arg3[%c0_16, %c0_17] : memref<8x128xf32, #tpu.memory_space<vmem>>, vector<8x128xf32>
    tpu.vector_store %arg3[%c0_16, %c0_17], %51 {strides = array<i32>} : memref<8x128xf32, #tpu.memory_space<vmem>>, vector<8x128xf32>,
    return
  }
  func.func @transform_0(%arg0: i32) -> (i32, i32) {
    %c0_i32 = arith.constant 0 : i32
    %c0_i32_0 = arith.constant 0 : i32
    return %arg0, %c0_i32 : i32, i32
  }
  func.func @transform_1(%arg0: i32) -> (i32, i32) {
    %c0_i32 = arith.constant 0 : i32
    %c0_i32_0 = arith.constant 0 : i32
    return %arg0, %c0_i32 : i32, i32
  }
  func.func @transform_2(%arg0: i32) -> (i32, i32) {
    %c0_i32 = arith.constant 0 : i32
    %c0_i32_0 = arith.constant 0 : i32
    %c0_i32_1 = arith.constant 0 : i32
    return %c0_i32, %c0_i32_0 : i32, i32
  }
}

</mosaic_0001>

<bundles_post_ra>
// kernel: tpu_custom_call.1
= control target key start
LH: loop header
LB: loop body
LE: loop exit
PB: predicated region body
PF: predicated region fallthrough
CT: control target
= control target key end

     0   :  { %7 = vsyncpa [#allocation3], 0  ;;  %s323_s0 = inlined_call_operand.hbm [shape: f32[16,128], index: 0, kind: input, shape index: {}]   ;;  %s324_s1 = inlined_call_operand.hbm [shape: f32[16,128], index: 1, kind: input, shape index: {}]   ;;  %s325_s2 = inlined_call_operand.hbm [shape: f32[8,128], index: 2, kind: output, shape index: {}]  }
   0x1   :  { %8 = vsyncpa [#allocation6], 0 }
   0x2   :  { %9 = vsyncpa [#allocation4], 0  ;;  %s14_s11 = sshll.u32 %s323_s0, 4  ;;  %s270_s12 = smov [#allocation2]   ;;  %s15_s11 = int_to_ptr.hbm [resolvable:$true] %s14_s11 }
   0x3   :  { %s16_s13 = sshll.u32 %s270_s12, 4  ;;  %s27_s16 = sshll.u32 %s324_s1, 4  ;;  %s17_s13 = int_to_ptr.vmem [resolvable:$true] %s16_s13  ;;  %s28_s16 = int_to_ptr.hbm [resolvable:$true] %s27_s16 }
   0x4   :  { %s271_s17 = smov 128   ;;  %s272_s18 = smov 8  }
   0x5   :  { %22 = dma.hbm_to_vmem [thread:$0]  %s15_s11, 256, %s17_s13, [#allocation3], %s271_s17, %s271_s17, %s272_s18  }
   0x6   :  { %s273_s19 = smov [#allocation5]  }
   0x7   :  { %s29_s20 = sshll.u32 %s273_s19, 4  ;;  %s30_s20 = int_to_ptr.vmem [resolvable:$true] %s29_s20 }
   0x8   :  { %35 = dma.hbm_to_vmem [thread:$0]  %s28_s16, 256, %s30_s20, [#allocation6], %s271_s17, %s271_s17, %s272_s18  }
   0x9   :  { %264 = dma.done.wait [#allocation3], 256  }
   0xa   :  { %265 = vsyncadd [#allocation3], 4294967040 }
   0xb   :  { %266 = dma.done.wait [#allocation6], 256  }
   0xc   :  { %267 = vsyncadd [#allocation6], 4294967040  ;;  %v296_v0 = vld [vmem:[#allocation2] sm:$0xff]  ;;  %v298_v1 = vld [vmem:[#allocation2 + $0x8] sm:$0xff]  ;;  %s274_s0 = smov [#allocation7]   ;;  %s159_s23 = sshll.u32 %s325_s2, 4  ;;  %s160_s23 = int_to_ptr.hbm [resolvable:$true] %s159_s23 }
   0xd   :  { %v54_v2 = vand.u32 2147483647, %v296_v0  ;;  %v55_v3 = vand.u32 2147483647, %v298_v1  ;;  %v52_v12 = vld [vmem:[#allocation5] sm:$0xff]  ;;  %v53_v14 = vld [vmem:[#allocation5 + $0x8] sm:$0xff] }
   0xe   :  { %v104_v18 = vmul.f32 2.0, %v52_v12  ;;  %v105_v20 = vmul.f32 2.0, %v53_v14  ;;  %vm98_vm0 = vcmp.ge.f32.partialorder %v296_v0, 0.0  ;;  %vm99_vm1 = vcmp.ge.f32.partialorder %v298_v1, 0.0  ;;  %s157_s1 = sshll.u32 %s274_s0, 4  ;;  %s158_s1 = int_to_ptr.vmem [resolvable:$true] %s157_s1 }
   0xf   :  { %v56_v4 = vsub.f32 0.0, %v54_v2  ;;  %v57_v5 = vsub.f32 0.0, %v55_v3  ;;  %v62_v46 = vmax.f32 %v296_v0, 0.0  ;;  %v63_v47 = vmax.f32 %v298_v1, 0.0 }
  0x10   :  { %v106_v24 = vsub.f32 1.0, %v104_v18  ;;  %v107_v26 = vsub.f32 1.0, %v105_v20  ;;  %v64_v48 = vmul.f32 %v52_v12, %v296_v0  ;;  %v65_v50 = vmul.f32 %v53_v14, %v298_v1 }
  0x11   :  { %v58_v6 = vmul.f32 1.442695, %v56_v4  ;;  %v60_v7 = vmul.f32 1.442695, %v57_v5  ;;  %v114_v61 = vmul.f32 -0.5, %v52_v12  ;;  %v115_v62 = vmul.f32 -0.5, %v53_v14 }
  0x12   :  { %v66_v60 = vsub.f32 %v62_v46, %v64_v48  ;;  %v67_v0 = vsub.f32 %v63_v47, %v65_v50 }
  0x13   :  { %176 = vpow2.f32 %v58_v6 }
  0x14   :  { %178 = vpow2.f32 %v60_v7  ;;  %v116_v7 = vadd.f32 0.75, %v114_v61 }
  0x19   :  { %v177_v8 = vpop.eup %176 }
  0x1a   :  { %v179_v9 = vpop.eup %178  ;;  %v68_v10 = vadd.f32 1.0, %v177_v8  ;;  %v71_v36 = vmul.f32 -0.5, %v177_v8  ;;  %v74_v41 = vand.u32 2147483647, %v177_v8 }
  0x1b   :  { %v77_v11 = vadd.f32 1.0, %v179_v9  ;;  %v80_v37 = vmul.f32 -0.5, %v179_v9  ;;  %v83_v44 = vand.u32 2147483647, %v179_v9 }
  0x1c   :  { %180 = vrcp.f32 %v68_v10  ;;  %v72_v39 = vadd.f32 1.0, %v71_v36  ;;  %vm308_vm2 = vcmp.lt.f32.partialorder %v74_v41, 0.0004427343 }
  0x1d   :  { %182 = vrcp.f32 %v77_v11  ;;  %v81_v42 = vadd.f32 1.0, %v80_v37  ;;  %vm312_vm3 = vcmp.lt.f32.partialorder %v83_v44, 0.0004427343 }
  0x1e   :  { %184 = vlog2.f32 %v68_v10  ;;  %v73_v52 = vmul.f32 %v177_v8, %v72_v39 }
  0x1f   :  { %186 = vlog2.f32 %v77_v11  ;;  %v82_v56 = vmul.f32 %v179_v9, %v81_v42 }
  0x22   :  { %v181_v13 = vpop.eup %180 }
  0x23   :  { %v183_v15 = vpop.eup %182  ;;  %v92_v16 = vmul.f32 %v181_v13, %v68_v10 }
  0x24   :  { %v93_v17 = vmul.f32 %v183_v15, %v77_v11  ;;  %v185_v38 = vpop.eup %184 }
  0x25   :  { %v94_v19 = vsub.f32 2.0, %v92_v16  ;;  %v187_v40 = vpop.eup %186  ;;  %v70_v51 = vmul.f32 0.6931472, %v185_v38 }
  0x26   :  { %v95_v21 = vsub.f32 2.0, %v93_v17  ;;  %v79_v55 = vmul.f32 0.6931472, %v187_v40 }
  0x27   :  { %v96_v22 = vmul.f32 %v181_v13, %v94_v19  ;;  %v76_v1 = vsel %vm308_vm2, %v73_v52, %v70_v51 }
  0x28   :  { %v97_v23 = vmul.f32 %v183_v15, %v95_v21  ;;  %v85_v3 = vsel %vm312_vm3, %v82_v56, %v79_v55  ;;  %v86_v6 = vadd.f32 %v76_v1, %v66_v60 }
  0x29   :  { %v100_v25 = vmul.f32 %v177_v8, %v96_v22  ;;  %v117_v8 = vadd.f32 0.75, %v115_v62  ;;  %v87_v10 = vadd.f32 %v85_v3, %v67_v0 }
  0x2a   :  { %v101_v27 = vmul.f32 %v179_v9, %v97_v23  ;;  %v144_v17 = vmul.f32 %v116_v7, %v86_v6 }
  0x2b   :  { %v102_v28 = vsel %vm98_vm0, %v96_v22, %v100_v25  ;;  %v145_v20 = vmul.f32 %v117_v8, %v87_v10 }
  0x2c   :  { %v103_v29 = vsel %vm99_vm1, %v97_v23, %v101_v27  ;;  %v108_v30 = vmul.f32 %v106_v24, %v102_v28 }
  0x2d   :  { %v109_v31 = vmul.f32 %v107_v26, %v103_v29 }
  0x2e   :  { %v110_v32 = vadd.f32 %v108_v30, %v52_v12 }
  0x2f   :  { %v111_v33 = vadd.f32 %v109_v31, %v53_v14 }
  0x30   :  { %v112_v34 = vmax.f32 %v110_v32, 0.0 }
  0x31   :  { %v113_v35 = vmax.f32 %v111_v33, 0.0 }
  0x32   :  { %188 = vrsqrt.f32 %v112_v34  ;;  %vm125_vm4 = vcmp.eq.f32.partialorder %v112_v34, inf  ;;  %v128_v11 = vand.u32 2147483648, %v112_v34  ;;  %vm127_vm5 = vcmp.eq.f32.partialorder %v112_v34, 0.0 }
  0x33   :  { %190 = vrsqrt.f32 %v113_v35  ;;  %vm137_vm6 = vcmp.eq.f32.partialorder %v113_v35, inf  ;;  %v140_v14 = vand.u32 2147483648, %v113_v35  ;;  %vm139_vm7 = vcmp.eq.f32.partialorder %v113_v35, 0.0 }
  0x38   :  { %v189_v43 = vpop.eup %188 }
  0x39   :  { %v191_v45 = vpop.eup %190  ;;  %v119_v49 = vmul.f32 %v189_v43, %v112_v34 }
  0x3a   :  { %v131_v53 = vmul.f32 %v191_v45, %v113_v35 }
  0x3b   :  { %v120_v57 = vmul.f32 %v189_v43, %v119_v49 }
  0x3c   :  { %v132_v59 = vmul.f32 %v191_v45, %v131_v53 }
  0x3d   :  { %v121_v63 = vmul.f32 0.5, %v120_v57 }
  0x3e   :  { %v133_v2 = vmul.f32 0.5, %v132_v59 }
  0x3f   :  { %v122_v4 = vsub.f32 1.5, %v121_v63 }
  0x40   :  { %v134_v5 = vsub.f32 1.5, %v133_v2 }
  0x41   :  { %v123_v9 = vmul.f32 %v189_v43, %v122_v4 }
  0x42   :  { %v135_v12 = vmul.f32 %v191_v45, %v134_v5 }
  0x43   :  { %v124_v13 = vmul.f32 %v123_v9, %v112_v34 }
  0x44   :  { %v136_v15 = vmul.f32 %v135_v12, %v113_v35 }
  0x45   :  { %v126_v16 = vsel %vm125_vm4, %v112_v34, %v124_v13 }
  0x46   :  { %v129_v18 = vsel %vm127_vm5, %v128_v11, %v126_v16  ;;  %v138_v19 = vsel %vm137_vm6, %v113_v35, %v136_v15 }
  0x47   :  { %v141_v21 = vsel %vm139_vm7, %v140_v14, %v138_v19  ;;  %v142_v22 = vmul.f32 %v129_v18, %v112_v34 }
  0x48   :  { %v143_v23 = vmul.f32 %v141_v21, %v113_v35 }
  0x49   :  { %v146_v24 = vmul.f32 %v144_v17, %v142_v22 }
  0x4a   :  { %v147_v25 = vmul.f32 %v145_v20, %v143_v23 }
  0x4c   :  { %v148_v26 = vadd.f32 %v147_v25, %v146_v24 }
  0x4e   :  { %151 = vst [vmem:[#allocation7] sm:$0xff] %v148_v26 }
  0x4f   :  { %162 = dma.vmem_to_hbm [thread:$0]  %s158_s1, 128, %s160_s23, [#allocation4]  }
  0x50   :  { %268 = dma.done.wait [#allocation4], 128  }
  0x51   :  { %269 = vsyncadd [#allocation4], 4294967168 }
  0x52   :  { %167 = vsyncpa [#allocation3], 1 }
  0x53   :  { %168 = vsyncpa [#allocation6], 1 }
  0x54   :  { %169 = vsyncpa [#allocation4], 1 }

</bundles_post_ra>
